<compile_context>
chip_gen: v6e
topology: v6e:2x2x1
jax: 0.10.0
libtpu: 0.0.40
codegen_flags: <defaults>
</compile_context>

<pallas_src>
import functools

import jax
import jax.numpy as jnp
from jax.experimental import pallas as pl
from jax.experimental.pallas import tpu as pltpu


# ---------------------------------------------------------------------------
# Pallas kernel: out = dropout(x + pe), elementwise, lane-dense blocks
# ---------------------------------------------------------------------------
def _pos_enc_kernel(seed_ref, x_ref, pe_ref, o_ref, *,
                    p: float, train: bool, lanes_per_row: int):
    # x_ref/o_ref block: (B, LANES);  pe_ref block: (1, LANES)
    x = x_ref[...].astype(jnp.float32)
    pe = pe_ref[...].astype(jnp.float32)
    y = x + pe                                    # sublane broadcast over batch

    if train and 0.0 < p < 1.0:
        lanes = y.shape[1]
        t = pl.program_id(0)
        # Global element index: batch row * (S*D) + lane offset within the row.
        b_idx = jax.lax.broadcasted_iota(jnp.int32, y.shape, 0)
        l_idx = jax.lax.broadcasted_iota(jnp.int32, y.shape, 1)
        gidx = b_idx * lanes_per_row + (t * lanes + l_idx)

        # Counter-based PRNG: murmur3 fmix32 of (seed, global index).
        h = gidx.astype(jnp.uint32)
        h = h + seed_ref[0].astype(jnp.uint32) * jnp.uint32(0x9E3779B9)
        h = h ^ (h >> 16)
        h = h * jnp.uint32(0x85EBCA6B)
        h = h ^ (h >> 13)
        h = h * jnp.uint32(0xC2B2AE35)
        h = h ^ (h >> 16)

        # keep iff uniform-u32 >= p * 2^32  (inverted dropout, torch semantics)
        threshold = jnp.uint32(min(int(p * 4294967296.0), 0xFFFFFFFF))
        keep = h >= threshold
        y = jnp.where(keep, y * jnp.float32(1.0 / (1.0 - p)), jnp.zeros_like(y))

    o_ref[...] = y.astype(o_ref.dtype)


# ---------------------------------------------------------------------------
# Buffer setup: the registered `pe` buffer from __init__
# ---------------------------------------------------------------------------
def make_pe_table(d_model: int, max_len: int) -> jnp.ndarray:
    position = jnp.arange(0, max_len, dtype=jnp.float32)[:, None]            # (L, 1)
    div_term = jnp.exp(
        jnp.arange(0, d_model, 2, dtype=jnp.float32)
        * (-jnp.log(jnp.float32(10000.0)) / d_model)
    )                                                                         # (D/2,)
    angles = position * div_term[None, :]                                     # (L, D/2)
    pe = jnp.zeros((max_len, d_model), dtype=jnp.float32)
    pe = pe.at[:, 0::2].set(jnp.sin(angles))
    pe = pe.at[:, 1::2].set(jnp.cos(angles))
    return pe[None, :, :]                                                     # (1, L, D)


# ---------------------------------------------------------------------------
# Tile chooser: largest multiple-of-128 lane tile dividing S*D under a VMEM cap
# ---------------------------------------------------------------------------
def _choose_lane_tile(total_lanes: int, batch: int, itemsize: int,
                      vmem_budget_bytes: int = 24 * 1024 * 1024) -> int:
    if total_lanes % 128 != 0:
        return total_lanes                        # full-extent fallback block
    # double-buffered x + out blocks of (batch, lanes) plus a (1, lanes) pe block
    per_lane_bytes = 2 * itemsize * (2 * batch + 1)
    cap = max(128, vmem_budget_bytes // per_lane_bytes)
    best = 128
    t = 128
    while t <= min(total_lanes, cap):
        if total_lanes % t == 0:
            best = t
        t += 128
    return best


# ---------------------------------------------------------------------------
# Wrapper (forward pass of the module)
# ---------------------------------------------------------------------------
def positional_encoding(x: jnp.ndarray,
                        pe: jnp.ndarray,
                        *,
                        p: float = 0.1,
                        train: bool = False,
                        seed: int = 0) -> jnp.ndarray:
    """x: (B, S, D);  pe: (1, max_len, D) float32."""
    B, S, D = x.shape
    max_len = pe.shape[1]
    total = S * D

    if train and p >= 1.0:                        # torch.nn.Dropout(p=1) -> all zeros
        return jnp.zeros_like(x)

    # Flatten (S, D) -> lane-dense last axis (row-major reshape is free).
    x2 = x.reshape(B, total)
    if total % 128 == 0:
        # Full pe table; the first-S-rows window is picked by the index_map.
        pe2 = pe.reshape(1, max_len * D)
    else:
        # Ragged fallback: single full-extent block over a sliced pe window.
        pe2 = pe[:, :S, :].reshape(1, total)

    lanes = _choose_lane_tile(total, B, jnp.dtype(x.dtype).itemsize)
    grid = (total // lanes,)

    seed_arr = jnp.array([seed], dtype=jnp.int32)
    do_dropout = bool(train) and (0.0 < p < 1.0)
    kernel = functools.partial(_pos_enc_kernel, p=float(p), train=do_dropout,
                               lanes_per_row=total)

    out = pl.pallas_call(
        kernel,
        out_shape=jax.ShapeDtypeStruct((B, total), x.dtype),
        grid_spec=pltpu.PrefetchScalarGridSpec(
            num_scalar_prefetch=1,
            grid=grid,
            in_specs=[
                pl.BlockSpec((B, lanes), lambda t, seed: (0, t)),   # x
                pl.BlockSpec((1, lanes), lambda t, seed: (0, t)),   # pe window
            ],
            out_specs=pl.BlockSpec((B, lanes), lambda t, seed: (0, t)),
        ),
        compiler_params=pltpu.CompilerParams(
            dimension_semantics=("parallel",),          # shards tiles across v7x's 2 TCs
            vmem_limit_bytes=48 * 1024 * 1024,
        ),
    )(seed_arr, x2, pe2)

    return out.reshape(B, S, D)


if __name__ == "__main__":
    # Small shapes consistent with the module's forward: (batch, seq, d_model)
    B, S, D = 2, 8, 32
    MAX_LEN = 64

    key = jax.random.PRNGKey(0)
    x = jax.random.normal(key, (B, S, D), dtype=jnp.float32)
    pe = make_pe_table(D, MAX_LEN)

    # Eval-mode forward (dropout = identity), deterministic.
    out = jax.block_until_ready(positional_encoding(x, pe, p=0.1, train=False))
    ref = x + pe[:, :S, :]
    assert jnp.allclose(out, ref, atol=1e-6), "mismatch vs reference (eval mode)"

    # Train-mode dropout: kept elements scaled by 1/(1-p), dropped are zero.
    p = 0.1
    out_train = jax.block_until_ready(
        positional_encoding(x, pe, p=p, train=True, seed=42))
    assert out_train.shape == (B, S, D)
    mask = out_train != 0.0
    expected = jnp.where(mask, ref * (1.0 / (1.0 - p)), 0.0)
    assert jnp.allclose(out_train, expected, atol=1e-5), "dropout scaling mismatch"
    n_drop = int(jnp.sum(~mask))
    assert 0 < n_drop < B * S * D, "dropout mask degenerate"

    print("KERNEL_OK")
</pallas_src>

<mosaic_0001>
module attributes {stable_mosaic.version = 11 : i64} {
  func.func @_pos_enc_kernel(%arg0: i32, %arg1: memref<1xi32, #tpu.memory_space<smem>>, %arg2: memref<2x256xf32, #tpu.memory_space<vmem>>, %arg3: memref<1x256xf32, #tpu.memory_space<vmem>>, %arg4: memref<2x256xf32, #tpu.memory_space<vmem>>) attributes {dimension_semantics = [#tpu.dimension_semantics<parallel>], iteration_bounds = array<i64: 1>, scalar_prefetch = 1 : i64, scratch_operands = 0 : i64, tpu.core_type = #tpu.core_type<tc>, window_params = [{transform_indices = @transform_0, window_bounds = array<i64: 2, 256>}, {transform_indices = @transform_1, window_bounds = array<i64: 1, 256>}, {transform_indices = @transform_2, window_bounds = array<i64: 2, 256>}]} {
    %c0 = arith.constant 0 : index
    %c0_0 = arith.constant 0 : index
    %0 = vector.load %arg2[%c0, %c0_0] : memref<2x256xf32, #tpu.memory_space<vmem>>, vector<2x256xf32>
    %c0_1 = arith.constant 0 : index
    %c0_2 = arith.constant 0 : index
    %1 = vector.load %arg3[%c0_1, %c0_2] : memref<1x256xf32, #tpu.memory_space<vmem>>, vector<1x256xf32>
    %2 = vector.broadcast %1 : vector<1x256xf32> to vector<2x256xf32>
    %3 = arith.addf %0, %2 : vector<2x256xf32>
    %c0_3 = arith.constant 0 : index
    %c0_4 = arith.constant 0 : index
    %4 = vector.load %arg4[%c0_3, %c0_4] : memref<2x256xf32, #tpu.memory_space<vmem>>, vector<2x256xf32>
    tpu.vector_store %arg4[%c0_3, %c0_4], %3 {strides = array<i32>} : memref<2x256xf32, #tpu.memory_space<vmem>>, vector<2x256xf32>,
    return
  }
  func.func @transform_0(%arg0: i32, %arg1: memref<1xi32, #tpu.memory_space<smem>>) -> (i32, i32) {
    %c0_i32 = arith.constant 0 : i32
    %c0_i32_0 = arith.constant 0 : i32
    return %c0_i32, %arg0 : i32, i32
  }
  func.func @transform_1(%arg0: i32, %arg1: memref<1xi32, #tpu.memory_space<smem>>) -> (i32, i32) {
    %c0_i32 = arith.constant 0 : i32
    %c0_i32_0 = arith.constant 0 : i32
    return %c0_i32, %arg0 : i32, i32
  }
  func.func @transform_2(%arg0: i32, %arg1: memref<1xi32, #tpu.memory_space<smem>>) -> (i32, i32) {
    %c0_i32 = arith.constant 0 : i32
    %c0_i32_0 = arith.constant 0 : i32
    return %c0_i32, %arg0 : i32, i32
  }
}

</mosaic_0001>

<bundles_post_ra>
// kernel: tpu_custom_call.1
= control target key start
LH: loop header
LB: loop body
LE: loop exit
PB: predicated region body
PF: predicated region fallthrough
CT: control target
= control target key end

     0   :  { %9 = vsyncpa [#allocation5], 0  ;;  %s179_s0 = inlined_call_operand.<no memory space> [shape: s32[1], index: 0, kind: input, shape index: {}]   ;;  %s180_s1 = inlined_call_operand.hbm [shape: f32[2,256], index: 1, kind: input, shape index: {}]   ;;  %s181_s2 = inlined_call_operand.hbm [shape: f32[1,2048], index: 2, kind: input, shape index: {}]   ;;  %s182_s3 = inlined_call_operand.hbm [shape: f32[2,256], index: 3, kind: output, shape index: {}]  }
   0x1   :  { %10 = vsyncpa [#allocation8], 0 }
   0x2   :  { %11 = vsyncpa [#allocation6], 0  ;;  %s146_s12 = smov [#allocation4]   ;;  %s147_s14 = smov [#allocation7]  }
   0x3   :  { %s18_s13 = sshll.u32 %s146_s12, 4  ;;  %s28_s15 = sshll.u32 %s147_s14, 4  ;;  %s19_s13 = int_to_ptr.vmem [resolvable:$true] %s18_s13  ;;  %s29_s15 = int_to_ptr.vmem [resolvable:$true] %s28_s15 }
   0x4   :  { %s88_s16 = scalar_lea.vmem %s19_s13, 64  ;;  %p93_p1 = scmp.lt.s32.totalorder %s19_s13, %s19_s13 }
   0x5   :  { %p89_p0 = scmp.ne.s32.totalorder %s19_s13, %s88_s16  ;;  %p94_p2 = scmp.lt.s32.totalorder %s88_s16, %s88_s16 }
   0x7   :  { %p95_p3 = por %p94_p2, %p93_p1 }
   0x9   :  { %p96_p4 = pnand %p95_p3, %p89_p0 }
   0xb   :  { %99 = shalt.err (!%p96_p4)
}
   0xc   :  { %21 = dma.hbm_to_vmem [thread:$0]  %s180_s1, 64, %s19_s13, [#allocation5]  }
   0xd   :  { %s108_s18 = scalar_lea.vmem %s29_s15, 32  ;;  %p113_p6 = scmp.lt.s32.totalorder %s29_s15, %s29_s15 }
   0xe   :  { %p109_p5 = scmp.ne.s32.totalorder %s29_s15, %s108_s18  ;;  %p114_p7 = scmp.lt.s32.totalorder %s108_s18, %s108_s18 }
  0x10   :  { %p115_p8 = por %p114_p7, %p113_p6 }
  0x12   :  { %p116_p9 = pnand %p115_p8, %p109_p5 }
  0x14   :  { %119 = shalt.err (!%p116_p9)
}
  0x15   :  { %31 = dma.hbm_to_vmem [thread:$0]  %s181_s2, 32, %s29_s15, [#allocation8]  }
  0x16   :  { %140 = dma.done.wait [#allocation5], 64  }
  0x17   :  { %141 = vsyncadd [#allocation5], 4294967232 }
  0x18   :  { %142 = dma.done.wait [#allocation8], 32  }
  0x19   :  { %143 = vsyncadd [#allocation8], 4294967264  ;;  %v41_v0 = vlaneseq  ;;  %v148_v1 = vmov 1983009808   ;;  %v39_v7 = vld [vmem:[#allocation7] sm:$0x3] }
  0x1a   :  { %v51_v2 = vunpack.c.l.s4 %v148_v1  ;;  %v38_v12 = vld [vmem:[#allocation4] sm:$0xf]  ;;  %s149_s1 = smov [#allocation9]  }
  0x1b   :  { %v42_v3 = vshrl.u32 %v41_v0, 7  ;;  %s66_s21 = sshll.u32 %s149_s1, 4  ;;  %s67_s21 = int_to_ptr.vmem [resolvable:$true] %s66_s21 }
  0x1c   :  { %v52_v6 = vunpack.c.0.s8 %v51_v2  ;;  %s120_s2 = scalar_lea.vmem %s67_s21, 64  ;;  %p125_p11 = scmp.lt.s32.totalorder %s67_s21, %s67_s21 }
  0x1d   :  { %v43_v4 = vsub.s32 0, %v42_v3  ;;  %v47_v5 = vsub.s32 1, %v42_v3  ;;  %p121_p10 = scmp.ne.s32.totalorder %s67_s21, %s120_s2  ;;  %p126_p12 = scmp.lt.s32.totalorder %s120_s2, %s120_s2 }
  0x1e   :  { %v55_v10 = vsub.s32 %v52_v6, %v42_v3 }
  0x1f   :  { %v44_v8 = vrot.slane %v39_v7, %v43_v4  ;;  %v48_v9 = vrot.slane %v39_v7, %v47_v5  ;;  %p127_p13 = por %p126_p12, %p125_p11 }
  0x21   :  { %v49_v11 = vcombine.low %v44_v8, %v48_v9  ;;  %p128_p0 = pnand %p127_p13, %p121_p10 }
  0x23   :  { %v56_v13 = vrot.slane %v49_v11, %v55_v10 }
  0x25   :  { %v58_v14 = vadd.f32 %v56_v13, %v38_v12 }
  0x27   :  { %59 = vst [vmem:[#allocation9] sm:$0xf] %v58_v14 }
  0x28   :  { %131 = shalt.err (!%p128_p0)
}
  0x29   :  { %69 = dma.vmem_to_hbm [thread:$0]  %s67_s21, 64, %s182_s3, [#allocation6]  }
  0x2a   :  { %144 = dma.done.wait [#allocation6], 64  }
  0x2b   :  { %145 = vsyncadd [#allocation6], 4294967232 }
  0x2c   :  { %73 = vsyncpa [#allocation5], 1 }
  0x2d   :  { %74 = vsyncpa [#allocation8], 1 }
  0x2e   :  { %75 = vsyncpa [#allocation6], 1 }

</bundles_post_ra>
